<compile_context>
chip_gen: v7x
topology: tpu7x:2x2x1
jax: 0.10.0
libtpu: 0.0.40
codegen_flags: <defaults>
</compile_context>

<pallas_src>
import jax
import jax.numpy as jnp
from jax.experimental import pallas as pl
from jax.experimental.pallas import tpu as pltpu

_EPS = 1e-6


def _round_up(x, m):
    return ((x + m - 1) // m) * m


def _iou_partial_kernel(pred_ref, target_ref, iand_ref, isum_ref):
    # pred_ref/target_ref: (TB, TN) tiles in their native dtypes.
    # iand_ref/isum_ref:   (TB, 1) f32 accumulators, resident across the k (N) axis.
    k = pl.program_id(1)

    @pl.when(k == 0)
    def _():
        iand_ref[...] = jnp.zeros_like(iand_ref)
        isum_ref[...] = jnp.zeros_like(isum_ref)

    p = pred_ref[...].astype(jnp.float32)
    t = target_ref[...].astype(jnp.float32)

    # Two cross-lane reductions per tile (XLU), accumulate in f32.
    iand_ref[...] += jnp.sum(t * p, axis=1, keepdims=True)
    isum_ref[...] += jnp.sum(t + p, axis=1, keepdims=True)


def iou_loss(pred, target, eps=_EPS):
    """Pallas equivalent of IoULoss().forward(pred, target) for NCHW inputs."""
    assert pred.shape == target.shape
    b = pred.shape[0]
    n = 1
    for d in pred.shape[1:]:
        n *= d

    # Keep native dtypes; just flatten the reduction axes to be lane-major.
    p2 = jnp.reshape(pred, (b, n))
    t2 = jnp.reshape(target, (b, n))

    p_bytes = jnp.dtype(p2.dtype).itemsize
    t_bytes = jnp.dtype(t2.dtype).itemsize
    max_bytes = max(p_bytes, t_bytes)
    min_bytes = min(p_bytes, t_bytes)
    # Sublane multiple: 8 for 4-byte, 16 for 2-byte, 32 for 1-byte dtypes.
    # Use the strictest requirement across both inputs.
    sub = max(8, 32 // min_bytes)

    # Conservative VMEM budget for input tiles (2 inputs x 2 pipeline buffers),
    # with headroom for v7x's 32 MiB scoped / 64 MiB physical VMEM.
    budget = 12 * 1024 * 1024
    per_buffer = budget // 4

    n_128 = _round_up(n, 128)
    tb = sub
    tn_max = min(n_128, max(128, (per_buffer // (tb * max_bytes)) // 128 * 128))
    # Use the minimal number of N-chunks, then shrink TN to the smallest
    # 128-multiple that covers N with that many chunks (minimizes padding).
    num_k = -(-n_128 // tn_max)
    tn = _round_up(-(-n_128 // num_k), 128)

    if tn >= n_128:
        tn = n_128
        # Whole N fits in a single tile: grow TB to amortize per-step overhead.
        tb_max = max(sub, (per_buffer // (tn * max_bytes)) // sub * sub)
        tb = min(_round_up(b, sub), tb_max)

    b_pad = _round_up(b, tb)
    n_pad = _round_up(n, tn)

    if (b_pad, n_pad) != (b, n):
        # Zero padding contributes nothing to sum(t*p) or sum(t+p); padded batch
        # rows are sliced off before the mean.
        p2 = jnp.pad(p2, ((0, b_pad - b), (0, n_pad - n)))
        t2 = jnp.pad(t2, ((0, b_pad - b), (0, n_pad - n)))

    grid = (b_pad // tb, n_pad // tn)

    cost = pl.CostEstimate(
        flops=3 * b_pad * n_pad,
        transcendentals=0,
        bytes_accessed=b_pad * n_pad * (p_bytes + t_bytes) + 2 * b_pad * 4,
    )

    iand, isum = pl.pallas_call(
        _iou_partial_kernel,
        out_shape=(
            jax.ShapeDtypeStruct((b_pad, 1), jnp.float32),
            jax.ShapeDtypeStruct((b_pad, 1), jnp.float32),
        ),
        grid=grid,
        in_specs=[
            pl.BlockSpec((tb, tn), lambda i, k: (i, k)),
            pl.BlockSpec((tb, tn), lambda i, k: (i, k)),
        ],
        out_specs=(
            pl.BlockSpec((tb, 1), lambda i, k: (i, 0)),
            pl.BlockSpec((tb, 1), lambda i, k: (i, 0)),
        ),
        compiler_params=pltpu.CompilerParams(
            dimension_semantics=("parallel", "arbitrary"),
        ),
        cost_estimate=cost,
    )(p2, t2)

    iand = iand[:b, 0]
    ior = isum[:b, 0] - iand
    iou = iand / (ior + eps)
    return jnp.mean(1.0 - iou)


def _iou_ref(pred, target, eps=_EPS):
    # Pure-JAX reference mirroring the PyTorch _iou for validation.
    pred = pred.astype(jnp.float32)
    target = target.astype(jnp.float32)
    iand = jnp.sum(target * pred, axis=(1, 2, 3))
    ior = jnp.sum(target, axis=(1, 2, 3)) + jnp.sum(pred, axis=(1, 2, 3)) - iand
    iou = iand / (ior + eps)
    return jnp.mean(1.0 - iou)


if __name__ == "__main__":
    key = jax.random.PRNGKey(0)
    k1, k2 = jax.random.split(key)
    B, C, H, W = 2, 4, 16, 16
    # Sigmoid-like predictions and binary-ish targets in [0, 1].
    pred = jax.nn.sigmoid(jax.random.normal(k1, (B, C, H, W), dtype=jnp.float32))
    target = (jax.random.uniform(k2, (B, C, H, W), dtype=jnp.float32) > 0.5).astype(
        jnp.float32
    )

    loss = iou_loss(pred, target)
    jax.block_until_ready(loss)

    ref = _iou_ref(pred, target)
    assert jnp.allclose(loss, ref, rtol=1e-5, atol=1e-6), (loss, ref)
    print("KERNEL_OK")
</pallas_src>

<mosaic_0001>
module attributes {stable_mosaic.version = 11 : i64} {
  func.func @_iou_partial_kernel(%arg0: i32, %arg1: i32, %arg2: memref<8x1024xf32, #tpu.memory_space<vmem>>, %arg3: memref<8x1024xf32, #tpu.memory_space<vmem>>, %arg4: memref<8x1xf32, #tpu.memory_space<vmem>>, %arg5: memref<8x1xf32, #tpu.memory_space<vmem>>) attributes {dimension_semantics = [#tpu.dimension_semantics<parallel>, #tpu.dimension_semantics<arbitrary>], iteration_bounds = array<i64: 1, 1>, scalar_prefetch = 0 : i64, scratch_operands = 0 : i64, tpu.core_type = #tpu.core_type<tc>, window_params = [{transform_indices = @transform_0, window_bounds = array<i64: 8, 1024>}, {transform_indices = @transform_1, window_bounds = array<i64: 8, 1024>}, {transform_indices = @transform_2, window_bounds = array<i64: 8, 1>}, {transform_indices = @transform_3, window_bounds = array<i64: 8, 1>}]} {
    %c0_i32 = arith.constant 0 : i32
    %0 = arith.cmpi eq, %arg1, %c0_i32 : i32
    %1 = arith.extui %0 : i1 to i32
    %c0_i32_0 = arith.constant 0 : i32
    %2 = arith.cmpi ne, %1, %c0_i32_0 : i32
    scf.if %2 {
      %cst_13 = arith.constant 0.000000e+00 : f32
      %17 = vector.broadcast %cst_13 : f32 to vector<8x1xf32>
      %c0_14 = arith.constant 0 : index
      %c0_15 = arith.constant 0 : index
      %18 = vector.load %arg4[%c0_14, %c0_15] : memref<8x1xf32, #tpu.memory_space<vmem>>, vector<8x1xf32>
      tpu.vector_store %arg4[%c0_14, %c0_15], %17 {strides = array<i32>} : memref<8x1xf32, #tpu.memory_space<vmem>>, vector<8x1xf32>,
      %cst_16 = arith.constant 0.000000e+00 : f32
      %19 = vector.broadcast %cst_16 : f32 to vector<8x1xf32>
      %c0_17 = arith.constant 0 : index
      %c0_18 = arith.constant 0 : index
      %20 = vector.load %arg5[%c0_17, %c0_18] : memref<8x1xf32, #tpu.memory_space<vmem>>, vector<8x1xf32>
      tpu.vector_store %arg5[%c0_17, %c0_18], %19 {strides = array<i32>} : memref<8x1xf32, #tpu.memory_space<vmem>>, vector<8x1xf32>,
    } else {
    }
    %c0 = arith.constant 0 : index
    %c0_1 = arith.constant 0 : index
    %3 = vector.load %arg2[%c0, %c0_1] : memref<8x1024xf32, #tpu.memory_space<vmem>>, vector<8x1024xf32>
    %c0_2 = arith.constant 0 : index
    %c0_3 = arith.constant 0 : index
    %4 = vector.load %arg3[%c0_2, %c0_3] : memref<8x1024xf32, #tpu.memory_space<vmem>>, vector<8x1024xf32>
    %c0_4 = arith.constant 0 : index
    %c0_5 = arith.constant 0 : index
    %5 = vector.load %arg4[%c0_4, %c0_5] : memref<8x1xf32, #tpu.memory_space<vmem>>, vector<8x1xf32>
    %6 = arith.mulf %4, %3 : vector<8x1024xf32>
    %cst = arith.constant dense<0.000000e+00> : vector<8xf32>
    %7 = vector.multi_reduction <add>, %6, %cst [1] : vector<8x1024xf32> to vector<8xf32>
    %8 = vector.shape_cast %7 : vector<8xf32> to vector<8x1xf32>
    %9 = arith.addf %5, %8 : vector<8x1xf32>
    %c0_6 = arith.constant 0 : index
    %c0_7 = arith.constant 0 : index
    %10 = vector.load %arg4[%c0_6, %c0_7] : memref<8x1xf32, #tpu.memory_space<vmem>>, vector<8x1xf32>
    tpu.vector_store %arg4[%c0_6, %c0_7], %9 {strides = array<i32>} : memref<8x1xf32, #tpu.memory_space<vmem>>, vector<8x1xf32>,
    %c0_8 = arith.constant 0 : index
    %c0_9 = arith.constant 0 : index
    %11 = vector.load %arg5[%c0_8, %c0_9] : memref<8x1xf32, #tpu.memory_space<vmem>>, vector<8x1xf32>
    %12 = arith.addf %4, %3 : vector<8x1024xf32>
    %cst_10 = arith.constant dense<0.000000e+00> : vector<8xf32>
    %13 = vector.multi_reduction <add>, %12, %cst_10 [1] : vector<8x1024xf32> to vector<8xf32>
    %14 = vector.shape_cast %13 : vector<8xf32> to vector<8x1xf32>
    %15 = arith.addf %11, %14 : vector<8x1xf32>
    %c0_11 = arith.constant 0 : index
    %c0_12 = arith.constant 0 : index
    %16 = vector.load %arg5[%c0_11, %c0_12] : memref<8x1xf32, #tpu.memory_space<vmem>>, vector<8x1xf32>
    tpu.vector_store %arg5[%c0_11, %c0_12], %15 {strides = array<i32>} : memref<8x1xf32, #tpu.memory_space<vmem>>, vector<8x1xf32>,
    return
  }
  func.func @transform_0(%arg0: i32, %arg1: i32) -> (i32, i32) {
    %c0_i32 = arith.constant 0 : i32
    return %arg0, %arg1 : i32, i32
  }
  func.func @transform_1(%arg0: i32, %arg1: i32) -> (i32, i32) {
    %c0_i32 = arith.constant 0 : i32
    return %arg0, %arg1 : i32, i32
  }
  func.func @transform_2(%arg0: i32, %arg1: i32) -> (i32, i32) {
    %c0_i32 = arith.constant 0 : i32
    %c0_i32_0 = arith.constant 0 : i32
    return %arg0, %c0_i32 : i32, i32
  }
  func.func @transform_3(%arg0: i32, %arg1: i32) -> (i32, i32) {
    %c0_i32 = arith.constant 0 : i32
    %c0_i32_0 = arith.constant 0 : i32
    return %arg0, %c0_i32 : i32, i32
  }
}

</mosaic_0001>

<bundles_post_ra>
// kernel: tpu_custom_call.1
= control target key start
LH: loop header
LB: loop body
LE: loop exit
PB: predicated region body
PF: predicated region fallthrough
CT: control target
= control target key end

     0   :  { %9 = vsyncpa [#allocation3], 0  ;;  %s231_s0 = inlined_call_operand.hbm [shape: f32[8,1024], index: 0, kind: input, shape index: {}]   ;;  %s232_s1 = inlined_call_operand.hbm [shape: f32[8,1024], index: 1, kind: input, shape index: {}]   ;;  %s233_s2 = inlined_call_operand.vmem [shape: f32[8,1], index: 2, kind: output, shape index: {0}]   ;;  %s234_s3 = inlined_call_operand.vmem [shape: f32[8,1], index: 3, kind: output, shape index: {1}]  }
   0x1   :  { %10 = vsyncpa [#allocation5], 0  ;;  %s162_s12 = smov [#allocation2]   ;;  %s163_s14 = smov [#allocation4]  }
   0x2   :  { %s17_s13 = sshll.u32 %s162_s12, 4  ;;  %s27_s15 = sshll.u32 %s163_s14, 4  ;;  %s18_s13 = int_to_ptr.vmem [resolvable:$true] %s17_s13  ;;  %s28_s15 = int_to_ptr.vmem [resolvable:$true] %s27_s15 }
   0x3   :  { %s114_s18 = scalar_lea.hbm %s231_s0, 1024 }
   0x4   :  { %p115_p0 = scmp.ne.s32.totalorder %s231_s0, %s114_s18  ;;  %p118_p1 = scmp.lt.u32.totalorder %s114_s18, %s231_s0 }
   0x6   :  { %p120_p2 = pnand %p118_p1, %p115_p0 }
   0x8   :  { %123 = shalt.err (!%p120_p2)
}
   0x9   :  { %s124_s23 = scalar_lea.vmem %s18_s13, 1024  ;;  %p129_p4 = scmp.lt.s32.totalorder %s18_s13, %s18_s13 }
   0xa   :  { %p125_p3 = scmp.ne.s32.totalorder %s18_s13, %s124_s23  ;;  %p130_p5 = scmp.lt.s32.totalorder %s124_s23, %s124_s23 }
   0xc   :  { %p131_p6 = por %p130_p5, %p129_p4 }
   0xe   :  { %p132_p7 = pnand %p131_p6, %p125_p3 }
  0x10   :  { %135 = shalt.err (!%p132_p7)
}
  0x11   :  { %20 = dma.hbm_to_vmem [thread:$0]  %s231_s0, 1024, %s18_s13, [#allocation3]  }
  0x12   :  { %s136_s28 = scalar_lea.hbm %s232_s1, 1024 }
  0x13   :  { %p137_p8 = scmp.ne.s32.totalorder %s232_s1, %s136_s28  ;;  %p140_p9 = scmp.lt.u32.totalorder %s136_s28, %s232_s1 }
  0x15   :  { %p142_p10 = pnand %p140_p9, %p137_p8 }
  0x17   :  { %145 = shalt.err (!%p142_p10)
}
  0x18   :  { %s146_s6 = scalar_lea.vmem %s28_s15, 1024  ;;  %p151_p12 = scmp.lt.s32.totalorder %s28_s15, %s28_s15 }
  0x19   :  { %p147_p11 = scmp.ne.s32.totalorder %s28_s15, %s146_s6  ;;  %p152_p13 = scmp.lt.s32.totalorder %s146_s6, %s146_s6 }
  0x1b   :  { %p153_p0 = por %p152_p13, %p151_p12 }
  0x1d   :  { %p154_p1 = pnand %p153_p0, %p147_p11 }
  0x1f   :  { %157 = shalt.err (!%p154_p1)
}
  0x20   :  { %30 = dma.hbm_to_vmem [thread:$0]  %s232_s1, 1024, %s28_s15, [#allocation5]  }
  0x21   :  { %158 = dma.done.wait [#allocation3], 1024  }
  0x22   :  { %159 = vsyncadd [#allocation3], 4294966272 }
  0x23   :  { %160 = dma.done.wait [#allocation5], 1024  }
  0x24   :  { %161 = vsyncadd [#allocation5], 4294966272  ;;  %vm41_vm0 = vcmask 7168   ;;  %v164_v0 = vmov 0.0   ;;  %v44_v1 = vld [vmem:[#allocation2] sm:$0xff]  ;;  %v45_v2 = vld [vmem:[#allocation2 + $0x8] sm:$0xff] }
  0x25   :  { %42 = vst.msk [vmem:[%s233_s2] sm:$0xff] %vm41_vm0, %v164_v0  ;;  %43 = vst.msk [vmem:[%s234_s3] sm:$0xff] %vm41_vm0, %v164_v0  ;;  %v46_v3 = vld [vmem:[#allocation2 + $0x10] sm:$0xff]  ;;  %v47_v4 = vld [vmem:[#allocation2 + $0x18] sm:$0xff] }
  0x26   :  { %v52_v5 = vld [vmem:[#allocation4] sm:$0xff]  ;;  %v53_v6 = vld [vmem:[#allocation4 + $0x8] sm:$0xff]  ;;  %v54_v7 = vld [vmem:[#allocation4 + $0x10] sm:$0xff] }
  0x27   :  { %v55_v8 = vld [vmem:[#allocation4 + $0x18] sm:$0xff]  ;;  %v61_v9 = vmul.f32 %v52_v5, %v44_v1  ;;  %v82_v10 = vadd.f32 %v52_v5, %v44_v1  ;;  %v62_v11 = vmul.f32 %v53_v6, %v45_v2  ;;  %v63_v12 = vmul.f32 %v54_v7, %v46_v3  ;;  %v48_v14 = vld [vmem:[#allocation2 + $0x20] sm:$0xff]  ;;  %v49_v19 = vld [vmem:[#allocation2 + $0x28] sm:$0xff] }
  0x28   :  { %v83_v13 = vadd.f32 %v53_v6, %v45_v2  ;;  %v56_v15 = vld [vmem:[#allocation4 + $0x20] sm:$0xff]  ;;  %v84_v16 = vadd.f32 %v54_v7, %v46_v3  ;;  %v64_v17 = vmul.f32 %v55_v8, %v47_v4  ;;  %v57_v20 = vld [vmem:[#allocation4 + $0x28] sm:$0xff]  ;;  %v85_v21 = vadd.f32 %v55_v8, %v47_v4  ;;  %v50_v25 = vld [vmem:[#allocation2 + $0x30] sm:$0xff] }
  0x29   :  { %v69_v18 = vadd.f32 %v62_v11, %v61_v9  ;;  %v65_v23 = vmul.f32 %v56_v15, %v48_v14  ;;  %v58_v26 = vld [vmem:[#allocation4 + $0x30] sm:$0xff]  ;;  %v86_v27 = vadd.f32 %v56_v15, %v48_v14  ;;  %v66_v29 = vmul.f32 %v57_v20, %v49_v19  ;;  %v51_v31 = vld [vmem:[#allocation2 + $0x38] sm:$0xff] }
  0x2a   :  { %v90_v22 = vadd.f32 %v83_v13, %v82_v10  ;;  %v59_v32 = vld [vmem:[#allocation4 + $0x38] sm:$0xff]  ;;  %v87_v33 = vadd.f32 %v57_v20, %v49_v19  ;;  %v67_v35 = vmul.f32 %v58_v26, %v50_v25  ;;  %v88_v37 = vadd.f32 %v58_v26, %v50_v25 }
  0x2b   :  { %v70_v24 = vadd.f32 %v69_v18, %v63_v12  ;;  %v68_v39 = vmul.f32 %v59_v32, %v51_v31  ;;  %v89_v43 = vadd.f32 %v59_v32, %v51_v31 }
  0x2c   :  { %v91_v28 = vadd.f32 %v90_v22, %v84_v16  ;;  %v60_v47 = vld [vmem:[%s233_s2] sm:$0xff] }
  0x2d   :  { %v71_v30 = vadd.f32 %v70_v24, %v64_v17  ;;  %v81_v50 = vld [vmem:[%s234_s3] sm:$0xff] }
  0x2e   :  { %v92_v34 = vadd.f32 %v91_v28, %v85_v21 }
  0x2f   :  { %v72_v36 = vadd.f32 %v71_v30, %v65_v23 }
  0x30   :  { %v93_v38 = vadd.f32 %v92_v34, %v86_v27 }
  0x31   :  { %v73_v40 = vadd.f32 %v72_v36, %v66_v29 }
  0x32   :  { %v94_v41 = vadd.f32 %v93_v38, %v87_v33 }
  0x33   :  { %v74_v42 = vadd.f32 %v73_v40, %v67_v35 }
  0x34   :  { %v95_v44 = vadd.f32 %v94_v41, %v88_v37 }
  0x35   :  { %v75_v45 = vadd.f32 %v74_v42, %v68_v39 }
  0x36   :  { %v96_v46 = vadd.f32 %v95_v44, %v89_v43 }
  0x37   :  { %76 = vadd.xlane.f32.xlu0 %v75_v45 }
  0x3b   :  { %97 = vadd.xlane.f32.xlu0 %v96_v46 }
  0xc4   :  { %v77_v48 = vpop.xlane.xlu0 %76 }
  0xc5   :  { %v78_v49 = vadd.f32 %v77_v48, %v60_v47 }
  0xc7   :  { %80 = vst.msk [vmem:[%s233_s2] sm:$0xff] %vm41_vm0, %v78_v49 }
  0xc8   :  { %v98_v51 = vpop.xlane.xlu0 %97 }
  0xc9   :  { %v99_v52 = vadd.f32 %v98_v51, %v81_v50 }
  0xcb   :  { %100 = vst.msk [vmem:[%s234_s3] sm:$0xff] %vm41_vm0, %v99_v52 }
  0xcc   :  { %109 = vsyncpa [#allocation3], 1 }
  0xcd   :  { %110 = vsyncpa [#allocation5], 1 }

</bundles_post_ra>
